<compile_context>
chip_gen: v5e
topology: v5e:2x2
jax: 0.10.0
libtpu: 0.0.40
codegen_flags: <defaults>
</compile_context>

<pallas_src>
import functools

import jax
import jax.numpy as jnp
from jax import lax
from jax.experimental import pallas as pl
from jax.experimental.pallas import tpu as pltpu

_MIB = 1024 * 1024


def _round_up(n, m):
    return -(-n // m) * m


def _vmem_capacity_bytes():
    try:
        return int(pltpu.get_tpu_info().vmem_capacity_bytes)
    except Exception:
        return 64 * _MIB  # conservative fallback (v7x per-TC VMEM)


def _pick_row_tile(rows, vmem_cap):
    # Big row tiles amortize per-grid-step overhead and halve W re-streaming,
    # but stay at 256 when VMEM is small (v7x: 64 MiB physical).
    if rows >= 512 and vmem_cap >= 100 * _MIB:
        return 512
    if rows >= 256:
        return 256
    return max(8, _round_up(rows, 8))


def _pick_lane_tile(dim_pad, preferred):
    # dim_pad is a multiple of 128; return the largest multiple of 128 that is
    # <= preferred and divides dim_pad.
    t = min(preferred, dim_pad)
    while dim_pad % t != 0:
        t -= 128
    return t


def _clamp_vmem_limit(nbytes, vmem_cap):
    want = nbytes + (nbytes >> 1)  # 1.5x headroom over the accounted buffers
    return int(min(max(want, 32 * _MIB), (vmem_cap * 9) // 10))


# ----------------------------------------------------------------------------
# Fused PreNorm(Linear) kernel:
#   y = LayerNorm(x) @ W + bias     (LayerNorm over the last dim D)
#
# Grid = (row_tiles, n_tiles, k_tiles).  The full (tm, D) x block is resident
# per row tile.  At k == 0 only the per-row stats (mean, rstd) are computed
# into tiny (tm, 1) scratches; each k step normalizes its K-slice on the fly,
# casts it to bf16 and feeds the MXU, accumulating into an f32 scratch.
# ----------------------------------------------------------------------------
def _prenorm_linear_kernel(x_ref, g_ref, b_ref, w_ref, bias_ref, o_ref,
                           mean_ref, rstd_ref, acc_ref, *, eps, d_true):
    k = pl.program_id(2)
    nk = pl.num_programs(2)

    @pl.when(k == 0)
    def _():
        # Stats over the TRUE feature count: padded columns are zero, so the
        # raw sums are unaffected; divide by d_true, not the padded width.
        x = x_ref[...].astype(jnp.float32)                    # (tm, D_pad)
        inv_d = jnp.float32(1.0 / d_true)
        mean = jnp.sum(x, axis=-1, keepdims=True) * inv_d
        var = jnp.sum(x * x, axis=-1, keepdims=True) * inv_d - mean * mean
        mean_ref[...] = mean
        rstd_ref[...] = lax.rsqrt(var + eps)

    tk = w_ref.shape[0]
    off = pl.multiple_of(k * tk, tk)
    x_blk = x_ref[:, pl.ds(off, tk)].astype(jnp.float32)       # (tm, tk)
    xn_blk = ((x_blk - mean_ref[...]) * rstd_ref[...]
              * g_ref[:, pl.ds(off, tk)] + b_ref[:, pl.ds(off, tk)])
    # bf16 operands into the MXU, f32 accumulation.
    contrib = jnp.dot(xn_blk.astype(jnp.bfloat16), w_ref[...],
                      preferred_element_type=jnp.float32)       # (tm, tn)

    @pl.when(k == 0)
    def _():
        acc_ref[...] = contrib

    @pl.when(k > 0)
    def _():
        acc_ref[...] += contrib

    @pl.when(k == nk - 1)
    def _():
        o_ref[...] = (acc_ref[...] + bias_ref[...]).astype(o_ref.dtype)


def prenorm_linear(x, gamma, beta, w, bias, *, eps=1e-5):
    """Fused y = LayerNorm(x) @ w + bias.  x: (B, S, D); w: (D, H); bias: (H,)."""
    B, S, D = x.shape
    H = w.shape[1]
    rows = B * S
    vmem_cap = _vmem_capacity_bytes()

    D_pad = _round_up(D, 128)
    H_pad = _round_up(H, 128)
    tm = _pick_row_tile(rows, vmem_cap)
    tn = _pick_lane_tile(H_pad, 256)
    tk = _pick_lane_tile(D_pad, 512)
    rows_p = _round_up(rows, tm)

    x2 = x.reshape(rows, D)
    if rows_p != rows or D_pad != D:
        x2 = jnp.pad(x2, ((0, rows_p - rows), (0, D_pad - D)))

    # gamma/beta padded with zeros (padded columns normalize to 0); f32.
    g2 = jnp.pad(gamma.reshape(1, D), ((0, 0), (0, D_pad - D))).astype(jnp.float32)
    b2 = jnp.pad(beta.reshape(1, D), ((0, 0), (0, D_pad - D))).astype(jnp.float32)
    # W padded with zero rows (K) and cols (N); bf16 for the MXU.
    w_p = jnp.pad(w, ((0, D_pad - D), (0, H_pad - H))).astype(jnp.bfloat16)
    bias2 = jnp.pad(bias.reshape(1, H), ((0, 0), (0, H_pad - H))).astype(jnp.float32)

    grid = (rows_p // tm, H_pad // tn, D_pad // tk)

    x_bytes = jnp.dtype(x.dtype).itemsize
    out_bytes = x_bytes
    vmem_need = (2 * tm * D_pad * x_bytes        # x (double-buffered)
                 + 2 * 2 * D_pad * 4             # gamma + beta
                 + 2 * tk * tn * 2               # W (bf16)
                 + 2 * tn * 4                    # bias
                 + 2 * tm * tn * out_bytes       # out
                 + tm * tn * 4 + 2 * tm * 4)     # acc + mean + rstd scratch
    vmem_limit = _clamp_vmem_limit(vmem_need, vmem_cap)

    out = pl.pallas_call(
        functools.partial(_prenorm_linear_kernel, eps=eps, d_true=D),
        out_shape=jax.ShapeDtypeStruct((rows_p, H_pad), x.dtype),
        grid_spec=pltpu.PrefetchScalarGridSpec(
            num_scalar_prefetch=0,
            grid=grid,
            in_specs=[
                pl.BlockSpec((tm, D_pad), lambda i, j, k: (i, 0)),   # x: resident over j,k
                pl.BlockSpec((1, D_pad), lambda i, j, k: (0, 0)),    # gamma (resident)
                pl.BlockSpec((1, D_pad), lambda i, j, k: (0, 0)),    # beta  (resident)
                pl.BlockSpec((tk, tn), lambda i, j, k: (k, j)),      # W tile (bf16)
                pl.BlockSpec((1, tn), lambda i, j, k: (0, j)),       # bias tile
            ],
            out_specs=pl.BlockSpec((tm, tn), lambda i, j, k: (i, j)),
            scratch_shapes=[
                pltpu.VMEM((tm, 1), jnp.float32),   # mean
                pltpu.VMEM((tm, 1), jnp.float32),   # rstd
                pltpu.VMEM((tm, tn), jnp.float32),  # matmul accumulator
            ],
        ),
        compiler_params=pltpu.CompilerParams(
            dimension_semantics=("parallel", "parallel", "arbitrary"),
            vmem_limit_bytes=vmem_limit),
    )(x2, g2, b2, w_p, bias2)

    return out[:rows, :H].reshape(B, S, H)


# ----------------------------------------------------------------------------
# Standalone LayerNorm kernel (for PreNorm with an arbitrary injected `fn`).
# ----------------------------------------------------------------------------
def _layernorm_kernel(x_ref, g_ref, b_ref, o_ref, *, eps, d_true):
    x = x_ref[...].astype(jnp.float32)
    inv_d = jnp.float32(1.0 / d_true)
    mean = jnp.sum(x, axis=-1, keepdims=True) * inv_d
    var = jnp.sum(x * x, axis=-1, keepdims=True) * inv_d - mean * mean
    y = (x - mean) * lax.rsqrt(var + eps)
    o_ref[...] = (y * g_ref[...] + b_ref[...]).astype(o_ref.dtype)


def _ln_row_tile(rows, D_pad, x_bytes, vmem_cap):
    # Purely HBM-bound: grow tiles toward 1024 rows while 2x double-buffered
    # in+out blocks stay under ~3/4 of VMEM (caps naturally on v7x's 64 MiB).
    budget = (vmem_cap * 3) // 4
    tm = 1024
    while tm > 256 and 4 * tm * D_pad * x_bytes > budget:
        tm //= 2
    if rows < tm:
        return max(8, _round_up(rows, 8))
    return tm


def layer_norm(x, gamma, beta, *, eps=1e-5):
    """x: (B, S, D); gamma, beta: (D,). Normalize over the last dim."""
    B, S, D = x.shape
    rows = B * S
    vmem_cap = _vmem_capacity_bytes()
    D_pad = _round_up(D, 128)
    x_bytes = jnp.dtype(x.dtype).itemsize
    tm = _ln_row_tile(rows, D_pad, x_bytes, vmem_cap)
    rows_p = _round_up(rows, tm)

    x2 = x.reshape(rows, D)
    if rows_p != rows or D_pad != D:
        x2 = jnp.pad(x2, ((0, rows_p - rows), (0, D_pad - D)))
    g2 = jnp.pad(gamma.reshape(1, D), ((0, 0), (0, D_pad - D))).astype(jnp.float32)
    b2 = jnp.pad(beta.reshape(1, D), ((0, 0), (0, D_pad - D))).astype(jnp.float32)

    vmem_need = 4 * tm * D_pad * x_bytes + 2 * 2 * D_pad * 4
    vmem_limit = _clamp_vmem_limit(vmem_need, vmem_cap)

    out = pl.pallas_call(
        functools.partial(_layernorm_kernel, eps=eps, d_true=D),
        out_shape=jax.ShapeDtypeStruct((rows_p, D_pad), x.dtype),
        grid_spec=pltpu.PrefetchScalarGridSpec(
            num_scalar_prefetch=0,
            grid=(rows_p // tm,),
            in_specs=[
                pl.BlockSpec((tm, D_pad), lambda i: (i, 0)),
                pl.BlockSpec((1, D_pad), lambda i: (0, 0)),
                pl.BlockSpec((1, D_pad), lambda i: (0, 0)),
            ],
            out_specs=pl.BlockSpec((tm, D_pad), lambda i: (i, 0)),
        ),
        compiler_params=pltpu.CompilerParams(
            dimension_semantics=("parallel",),
            vmem_limit_bytes=vmem_limit),
    )(x2, g2, b2)
    return out[:rows, :D].reshape(B, S, D)


# ----------------------------------------------------------------------------
# Module wrappers mirroring the PyTorch PreNorm.
# ----------------------------------------------------------------------------
class PreNorm:
    """Generic PreNorm: y = fn(LayerNorm(x)) — fn is arbitrary user code."""
    # TODO(synk): an arbitrary torch `fn` cannot be fused generically; the
    # generic path runs the LayerNorm kernel and then the user-supplied fn.

    def __init__(self, dim, fn, gamma=None, beta=None, eps=1e-5):
        self.dim = dim
        self.fn = fn
        self.gamma = jnp.ones((dim,), jnp.float32) if gamma is None else gamma
        self.beta = jnp.zeros((dim,), jnp.float32) if beta is None else beta
        self.eps = eps

    def __call__(self, x, **kwargs):
        return self.fn(layer_norm(x, self.gamma, self.beta, eps=self.eps), **kwargs)


class PreNormLinear(PreNorm):
    """Fused fast path when fn is a Linear(dim -> H): a single pallas_call."""

    def __init__(self, dim, w, b, gamma=None, beta=None, eps=1e-5):
        super().__init__(dim, None, gamma, beta, eps)
        self.w = w
        self.b = b

    def __call__(self, x, **kwargs):
        return prenorm_linear(x, self.gamma, self.beta, self.w, self.b,
                              eps=self.eps)


def _ln_reference(x, gamma, beta, eps=1e-5):
    mu = x.mean(-1, keepdims=True)
    var = ((x - mu) ** 2).mean(-1, keepdims=True)
    return (x - mu) / jnp.sqrt(var + eps) * gamma + beta


def _reference(x, gamma, beta, w, b, eps=1e-5):
    return _ln_reference(x, gamma, beta, eps) @ w + b


if __name__ == "__main__":
    B, S, D = 2, 8, 32
    H = D

    key = jax.random.PRNGKey(0)
    kx, kw, kb = jax.random.split(key, 3)

    x = jax.random.normal(kx, (B, S, D), dtype=jnp.float32)

    # LayerNorm params (nn.LayerNorm default init: weight=1, bias=0)
    gamma = jnp.ones((D,), dtype=jnp.float32)
    beta = jnp.zeros((D,), dtype=jnp.float32)

    # Deterministic params for the injected `fn` (a Linear(D -> H))
    w = jax.random.normal(kw, (D, H), dtype=jnp.float32) * 0.02
    b = jax.random.normal(kb, (H,), dtype=jnp.float32) * 0.02

    # Fused fast path
    prenorm = PreNormLinear(D, w, b, gamma, beta)
    y = jax.block_until_ready(prenorm(x))
    assert y.shape == (B, S, H)

    # Correctness vs. pure-JAX f32 reference (bf16 MXU path -> relaxed tol)
    y_ref = _reference(x, gamma, beta, w, b)
    assert jnp.allclose(y, y_ref, atol=1e-2, rtol=1e-2)

    # Generic (unfused) path for arbitrary fn: LayerNorm kernel alone (f32)
    y_ln = jax.block_until_ready(layer_norm(x, gamma, beta))
    assert y_ln.shape == (B, S, D)
    assert jnp.allclose(y_ln, _ln_reference(x, gamma, beta), atol=1e-3, rtol=1e-3)

    print("KERNEL_OK")
</pallas_src>

<mosaic_0001>
module attributes {stable_mosaic.version = 11 : i64} {
  func.func @_prenorm_linear_kernel(%arg0: i32, %arg1: i32, %arg2: i32, %arg3: memref<16x128xf32, #tpu.memory_space<vmem>>, %arg4: memref<1x128xf32, #tpu.memory_space<vmem>>, %arg5: memref<1x128xf32, #tpu.memory_space<vmem>>, %arg6: memref<128x128xbf16, #tpu.memory_space<vmem>>, %arg7: memref<1x128xf32, #tpu.memory_space<vmem>>, %arg8: memref<16x128xf32, #tpu.memory_space<vmem>>, %arg9: memref<16x1xf32, #tpu.memory_space<vmem>>, %arg10: memref<16x1xf32, #tpu.memory_space<vmem>>, %arg11: memref<16x128xf32, #tpu.memory_space<vmem>>) attributes {dimension_semantics = [#tpu.dimension_semantics<parallel>, #tpu.dimension_semantics<parallel>, #tpu.dimension_semantics<arbitrary>], iteration_bounds = array<i64: 1, 1, 1>, scalar_prefetch = 0 : i64, scratch_operands = 3 : i64, tpu.core_type = #tpu.core_type<tc>, window_params = [{transform_indices = @transform_0, window_bounds = array<i64: 16, 128>}, {pipeline_mode = #tpu.pipeline_mode<synchronous>, transform_indices = @transform_1, window_bounds = array<i64: 1, 128>}, {pipeline_mode = #tpu.pipeline_mode<synchronous>, transform_indices = @transform_2, window_bounds = array<i64: 1, 128>}, {transform_indices = @transform_3, window_bounds = array<i64: 128, 128>}, {transform_indices = @transform_4, window_bounds = array<i64: 1, 128>}, {transform_indices = @transform_5, window_bounds = array<i64: 16, 128>}]} {
    %c0_i32 = arith.constant 0 : i32
    %0 = arith.cmpi eq, %arg2, %c0_i32 : i32
    %1 = arith.extui %0 : i1 to i32
    %c0_i32_0 = arith.constant 0 : i32
    %2 = arith.cmpi ne, %1, %c0_i32_0 : i32
    scf.if %2 {
      %c0_15 = arith.constant 0 : index
      %c0_16 = arith.constant 0 : index
      %33 = vector.load %arg3[%c0_15, %c0_16] : memref<16x128xf32, #tpu.memory_space<vmem>>, vector<16x128xf32>
      %cst_17 = arith.constant dense<0.000000e+00> : vector<16xf32>
      %34 = vector.multi_reduction <add>, %33, %cst_17 [1] : vector<16x128xf32> to vector<16xf32>
      %35 = vector.shape_cast %34 : vector<16xf32> to vector<16x1xf32>
      %cst_18 = arith.constant 3.125000e-02 : f32
      %36 = vector.broadcast %cst_18 : f32 to vector<16x1xf32>
      %37 = arith.mulf %35, %36 : vector<16x1xf32>
      %38 = arith.mulf %33, %33 : vector<16x128xf32>
      %cst_19 = arith.constant dense<0.000000e+00> : vector<16xf32>
      %39 = vector.multi_reduction <add>, %38, %cst_19 [1] : vector<16x128xf32> to vector<16xf32>
      %40 = vector.shape_cast %39 : vector<16xf32> to vector<16x1xf32>
      %cst_20 = arith.constant 3.125000e-02 : f32
      %41 = vector.broadcast %cst_20 : f32 to vector<16x1xf32>
      %42 = arith.mulf %40, %41 : vector<16x1xf32>
      %43 = arith.mulf %37, %37 : vector<16x1xf32>
      %44 = arith.subf %42, %43 : vector<16x1xf32>
      %c0_21 = arith.constant 0 : index
      %c0_22 = arith.constant 0 : index
      %45 = vector.load %arg9[%c0_21, %c0_22] : memref<16x1xf32, #tpu.memory_space<vmem>>, vector<16x1xf32>
      tpu.vector_store %arg9[%c0_21, %c0_22], %37 {strides = array<i32>} : memref<16x1xf32, #tpu.memory_space<vmem>>, vector<16x1xf32>,
      %cst_23 = arith.constant 9.99999974E-6 : f32
      %46 = vector.broadcast %cst_23 : f32 to vector<16x1xf32>
      %47 = arith.addf %44, %46 : vector<16x1xf32>
      %48 = math.rsqrt %47 : vector<16x1xf32>
      %c0_24 = arith.constant 0 : index
      %c0_25 = arith.constant 0 : index
      %49 = vector.load %arg10[%c0_24, %c0_25] : memref<16x1xf32, #tpu.memory_space<vmem>>, vector<16x1xf32>
      tpu.vector_store %arg10[%c0_24, %c0_25], %48 {strides = array<i32>} : memref<16x1xf32, #tpu.memory_space<vmem>>, vector<16x1xf32>,
    } else {
    }
    %c128_i32 = arith.constant 128 : i32
    %3 = arith.muli %arg2, %c128_i32 : i32
    %4 = tpu.assume_multiple %3, 128 : i32
    %c0 = arith.constant 0 : index
    %5 = arith.index_cast %4 : i32 to index
    %6 = vector.load %arg3[%c0, %5] : memref<16x128xf32, #tpu.memory_space<vmem>>, vector<16x128xf32>
    %c0_1 = arith.constant 0 : index
    %c0_2 = arith.constant 0 : index
    %7 = vector.load %arg9[%c0_1, %c0_2] : memref<16x1xf32, #tpu.memory_space<vmem>>, vector<16x1xf32>
    %8 = vector.broadcast %7 : vector<16x1xf32> to vector<16x128xf32>
    %9 = arith.subf %6, %8 : vector<16x128xf32>
    %c0_3 = arith.constant 0 : index
    %c0_4 = arith.constant 0 : index
    %10 = vector.load %arg10[%c0_3, %c0_4] : memref<16x1xf32, #tpu.memory_space<vmem>>, vector<16x1xf32>
    %11 = vector.broadcast %10 : vector<16x1xf32> to vector<16x128xf32>
    %12 = arith.mulf %9, %11 : vector<16x128xf32>
    %c0_5 = arith.constant 0 : index
    %13 = arith.index_cast %4 : i32 to index
    %14 = vector.load %arg4[%c0_5, %13] : memref<1x128xf32, #tpu.memory_space<vmem>>, vector<1x128xf32>
    %15 = vector.broadcast %14 : vector<1x128xf32> to vector<16x128xf32>
    %16 = arith.mulf %12, %15 : vector<16x128xf32>
    %c0_6 = arith.constant 0 : index
    %17 = arith.index_cast %4 : i32 to index
    %18 = vector.load %arg5[%c0_6, %17] : memref<1x128xf32, #tpu.memory_space<vmem>>, vector<1x128xf32>
    %19 = vector.broadcast %18 : vector<1x128xf32> to vector<16x128xf32>
    %20 = arith.addf %16, %19 : vector<16x128xf32>
    %21 = arith.truncf %20 : vector<16x128xf32> to vector<16x128xbf16>
    %c0_7 = arith.constant 0 : index
    %c0_8 = arith.constant 0 : index
    %22 = vector.load %arg6[%c0_7, %c0_8] : memref<128x128xbf16, #tpu.memory_space<vmem>>, vector<128x128xbf16>
    %cst = arith.constant dense<0.000000e+00> : vector<16x128xf32>
    %23 = tpu.matmul %21, %22, %cst {dimension_numbers = #tpu.dot_dimension_numbers<[1], [0], [0], [1], [0, 0, 1, 1], [], []>} : vector<16x128xbf16>, vector<128x128xbf16>, vector<16x128xf32> -> vector<16x128xf32>
    %c0_i32_9 = arith.constant 0 : i32
    %24 = arith.cmpi eq, %arg2, %c0_i32_9 : i32
    %25 = arith.extui %24 : i1 to i32
    %c0_i32_10 = arith.constant 0 : i32
    %26 = arith.cmpi ne, %25, %c0_i32_10 : i32
    scf.if %26 {
      %c0_15 = arith.constant 0 : index
      %c0_16 = arith.constant 0 : index
      %33 = vector.load %arg11[%c0_15, %c0_16] : memref<16x128xf32, #tpu.memory_space<vmem>>, vector<16x128xf32>
      tpu.vector_store %arg11[%c0_15, %c0_16], %23 {strides = array<i32>} : memref<16x128xf32, #tpu.memory_space<vmem>>, vector<16x128xf32>,
    } else {
    }
    %c0_i32_11 = arith.constant 0 : i32
    %27 = arith.cmpi sgt, %arg2, %c0_i32_11 : i32
    %28 = arith.extui %27 : i1 to i32
    %c0_i32_12 = arith.constant 0 : i32
    %29 = arith.cmpi ne, %28, %c0_i32_12 : i32
    scf.if %29 {
      %c0_15 = arith.constant 0 : index
      %c0_16 = arith.constant 0 : index
      %33 = vector.load %arg11[%c0_15, %c0_16] : memref<16x128xf32, #tpu.memory_space<vmem>>, vector<16x128xf32>
      %34 = arith.addf %33, %23 : vector<16x128xf32>
      %c0_17 = arith.constant 0 : index
      %c0_18 = arith.constant 0 : index
      %35 = vector.load %arg11[%c0_17, %c0_18] : memref<16x128xf32, #tpu.memory_space<vmem>>, vector<16x128xf32>
      tpu.vector_store %arg11[%c0_17, %c0_18], %34 {strides = array<i32>} : memref<16x128xf32, #tpu.memory_space<vmem>>, vector<16x128xf32>,
    } else {
    }
    %c0_i32_13 = arith.constant 0 : i32
    %30 = arith.cmpi eq, %arg2, %c0_i32_13 : i32
    %31 = arith.extui %30 : i1 to i32
    %c0_i32_14 = arith.constant 0 : i32
    %32 = arith.cmpi ne, %31, %c0_i32_14 : i32
    scf.if %32 {
      %c0_15 = arith.constant 0 : index
      %c0_16 = arith.constant 0 : index
      %33 = vector.load %arg11[%c0_15, %c0_16] : memref<16x128xf32, #tpu.memory_space<vmem>>, vector<16x128xf32>
      %c0_17 = arith.constant 0 : index
      %c0_18 = arith.constant 0 : index
      %34 = vector.load %arg7[%c0_17, %c0_18] : memref<1x128xf32, #tpu.memory_space<vmem>>, vector<1x128xf32>
      %35 = vector.broadcast %34 : vector<1x128xf32> to vector<16x128xf32>
      %36 = arith.addf %33, %35 : vector<16x128xf32>
      %c0_19 = arith.constant 0 : index
      %c0_20 = arith.constant 0 : index
      %37 = vector.load %arg8[%c0_19, %c0_20] : memref<16x128xf32, #tpu.memory_space<vmem>>, vector<16x128xf32>
      tpu.vector_store %arg8[%c0_19, %c0_20], %36 {strides = array<i32>} : memref<16x128xf32, #tpu.memory_space<vmem>>, vector<16x128xf32>,
    } else {
    }
    return
  }
  func.func @transform_0(%arg0: i32, %arg1: i32, %arg2: i32) -> (i32, i32) {
    %c0_i32 = arith.constant 0 : i32
    %c0_i32_0 = arith.constant 0 : i32
    return %arg0, %c0_i32 : i32, i32
  }
  func.func @transform_1(%arg0: i32, %arg1: i32, %arg2: i32) -> (i32, i32) {
    %c0_i32 = arith.constant 0 : i32
    %c0_i32_0 = arith.constant 0 : i32
    %c0_i32_1 = arith.constant 0 : i32
    return %c0_i32, %c0_i32_0 : i32, i32
  }
  func.func @transform_2(%arg0: i32, %arg1: i32, %arg2: i32) -> (i32, i32) {
    %c0_i32 = arith.constant 0 : i32
    %c0_i32_0 = arith.constant 0 : i32
    %c0_i32_1 = arith.constant 0 : i32
    return %c0_i32, %c0_i32_0 : i32, i32
  }
  func.func @transform_3(%arg0: i32, %arg1: i32, %arg2: i32) -> (i32, i32) {
    %c0_i32 = arith.constant 0 : i32
    return %arg2, %arg1 : i32, i32
  }
  func.func @transform_4(%arg0: i32, %arg1: i32, %arg2: i32) -> (i32, i32) {
    %c0_i32 = arith.constant 0 : i32
    %c0_i32_0 = arith.constant 0 : i32
    return %c0_i32, %arg1 : i32, i32
  }
  func.func @transform_5(%arg0: i32, %arg1: i32, %arg2: i32) -> (i32, i32) {
    %c0_i32 = arith.constant 0 : i32
    return %arg0, %arg1 : i32, i32
  }
}

</mosaic_0001>

<bundles_post_ra>
// kernel: tpu_custom_call.1
= control target key start
LH: loop header
LB: loop body
LE: loop exit
PB: predicated region body
PF: predicated region fallthrough
CT: control target
= control target key end

     0   :  { %10 = vsyncpa [#allocation6], 0  ;;  %s535_s0 = inlined_call_operand.hbm [shape: f32[16,128], index: 0, kind: input, shape index: {}]   ;;  %s536_s1 = inlined_call_operand.hbm [shape: f32[1,128], index: 1, kind: input, shape index: {}]   ;;  %s537_s2 = inlined_call_operand.vmem [shape: f32[1,128], index: 2, kind: input, shape index: {}]   ;;  %s538_s3 = inlined_call_operand.hbm [shape: bf16[128,128], index: 3, kind: input, shape index: {}]   ;;  %s539_s4 = inlined_call_operand.vmem [shape: f32[1,128], index: 4, kind: input, shape index: {}]   ;;  %s540_s5 = inlined_call_operand.hbm [shape: f32[16,128], index: 5, kind: output, shape index: {}]  }
   0x1   :  { %11 = vsyncpa [#allocation9], 0  ;;  %s31_s20 = sshll.u32 %s536_s1, 4  ;;  %s32_s20 = int_to_ptr.hbm [resolvable:$true] %s31_s20 }
   0x2   :  { %12 = vsyncpa [#allocation7], 0  ;;  %s456_s21 = smov [#allocation8]   ;;  %s17_s25 = sshll.u32 %s535_s0, 4  ;;  %s18_s25 = int_to_ptr.hbm [resolvable:$true] %s17_s25 }
   0x3   :  { %s33_s22 = sshll.u32 %s456_s21, 4  ;;  %s457_s26 = smov [#allocation5]   ;;  %s34_s22 = int_to_ptr.vmem [resolvable:$true] %s33_s22 }
   0x4   :  { %36 = dma.hbm_to_vmem [thread:$0]  %s32_s20, 16, %s34_s22, [#allocation9]  }
   0x5   :  { %s19_s27 = sshll.u32 %s457_s26, 4  ;;  %s458_s28 = smov 128   ;;  %s20_s27 = int_to_ptr.vmem [resolvable:$true] %s19_s27 }
   0x6   :  { %s459_s29 = smov 8   ;;  %s43_s6 = sshll.u32 %s538_s3, 4  ;;  %s44_s6 = int_to_ptr.hbm [resolvable:$true] %s43_s6 }
   0x7   :  { %25 = dma.hbm_to_vmem [thread:$0]  %s18_s25, 256, %s20_s27, [#allocation6], %s458_s28, %s458_s28, %s459_s29  }
   0x8   :  { %s460_s7 = smov [#allocation10]   ;;  %s461_s0 = smov 64  }
   0x9   :  { %s45_s8 = sshll.u32 %s460_s7, 4  ;;  %s462_s9 = smov 4   ;;  %s46_s8 = int_to_ptr.vmem [resolvable:$true] %s45_s8 }
   0xa   :  { %51 = dma.hbm_to_vmem [thread:$0]  %s44_s6, 1024, %s46_s8, [#allocation9], %s461_s0, %s461_s0, %s462_s9  }
   0xb   :  { %450 = dma.done.wait [#allocation6], 256  }
   0xc   :  { %451 = vsyncadd [#allocation6], 4294967040 }
   0xd   :  { %452 = dma.done.wait [#allocation9], 1040  }
   0xe   :  { %453 = vsyncadd [#allocation9], 4294966256  ;;  %v507_v0 = vld [vmem:[#allocation5] sm:$0xff]  ;;  %v512_v2 = vld [vmem:[#allocation5 + $0x8] sm:$0xff]  ;;  %v463_v4 = vmov 0   ;;  %vm90_vm0 = vcmask 7168  }
   0xf   :  { %72 = vadd.xlane.f32.xlu0 %v507_v0  ;;  %v78_v1 = vmul.f32 %v507_v0, %v507_v0  ;;  %v79_v3 = vmul.f32 %v512_v2, %v512_v2  ;;  %344 = vset.pattern.permute.xlu2 %v463_v4  ;;  %v334_v37 = vld [vmem:[#allocation10 + $0x38] sm:$0xff]  ;;  %v333_v38 = vld [vmem:[#allocation10 + $0x30] sm:$0xff]  ;;  %v332_v39 = vld [vmem:[#allocation10 + $0x28] sm:$0xff]  ;;  %s464_s13 = smov [#allocation11]   ;;  %s278_s17 = sshll.u32 %s540_s5, 4  ;;  %s279_s17 = int_to_ptr.hbm [resolvable:$true] %s278_s17 }
  0x10   :  { %345 = vset.pattern.permute.xlu0 %v463_v4  ;;  %346 = vset.pattern.permute.xlu1 %v463_v4  ;;  %v331_v40 = vld [vmem:[#allocation10 + $0x20] sm:$0xff]  ;;  %v330_v41 = vld [vmem:[#allocation10 + $0x18] sm:$0xff]  ;;  %v329_v42 = vld [vmem:[#allocation10 + $0x10] sm:$0xff]  ;;  %s276_s14 = sshll.u32 %s464_s13, 4  ;;  %s277_s14 = int_to_ptr.vmem [resolvable:$true] %s276_s14 }
  0x11   :  { %80 = vadd.xlane.f32.xlu1 %v78_v1  ;;  %230 = vmatpush.bf16.msra.mxu0 %v334_v37  ;;  %v328_v43 = vld [vmem:[#allocation10 + $0x8] sm:$0xff]  ;;  %v327_v44 = vld [vmem:[#allocation10] sm:$0xff]  ;;  %v347_v49 = vld [vmem:[#allocation8] ss:$0 sm:$0xff] }
  0x12   :  { %v348_v55 = vld [vmem:[%s537_s2] ss:$0 sm:$0xff] }
  0x13   :  { %v349_v60 = vld [vmem:[%s539_s4] ss:$0 sm:$0xff] }
  0x15   :  { %231 = vmatpush.bf16.msra.mxu0 %v333_v38 }
  0x17   :  { %74 = vadd.xlane.f32.xlu0 %v512_v2 }
  0x19   :  { %82 = vadd.xlane.f32.xlu1 %v79_v3  ;;  %232 = vmatpush.bf16.msra.mxu0 %v332_v39 }
  0x1d   :  { %233 = vmatpush.bf16.msra.mxu0 %v331_v40 }
  0x21   :  { %234 = vmatpush.bf16.msra.mxu0 %v330_v41 }
  0x25   :  { %235 = vmatpush.bf16.msra.mxu0 %v329_v42 }
  0x29   :  { %236 = vmatpush.bf16.msra.mxu0 %v328_v43 }
  0x2d   :  { %237 = vmatpush.bf16.msra.mxu0 %v327_v44 }
  0x82   :  { %v73_v5 = vpop.xlane.xlu0 %72 }
  0x83   :  { %v76_v6 = vmul.f32 0.03125, %v73_v5 }
  0x84   :  { %v81_v7 = vpop.xlane.xlu1 %80 }
  0x85   :  { %v86_v8 = vmul.f32 %v76_v6, %v76_v6  ;;  %91 = vst.msk [vmem:[#allocation2] sm:$0xff] %vm90_vm0, %v76_v6  ;;  %v84_v9 = vmul.f32 0.03125, %v81_v7 }
  0x87   :  { %v88_v10 = vsub.f32 %v84_v9, %v86_v8 }
  0x89   :  { %v93_v11 = vadd.f32 1e-05, %v88_v10 }
  0x8a   :  { %v75_v12 = vpop.xlane.xlu0 %74 }
  0x8b   :  { %350 = vrsqrt.f32 %v93_v11  ;;  %v77_v13 = vmul.f32 0.03125, %v75_v12  ;;  %vm101_vm2 = vweird.f32 %v93_v11 }
  0x8c   :  { %v83_v14 = vpop.xlane.xlu1 %82  ;;  %v123_v15 = vld [vmem:[#allocation2] sm:$0xff] }
  0x8d   :  { %v87_v16 = vmul.f32 %v77_v13, %v77_v13  ;;  %92 = vst.msk [vmem:[#allocation2 + $0x8] sm:$0xff] %vm90_vm0, %v77_v13  ;;  %v85_v17 = vmul.f32 0.03125, %v83_v14  ;;  %127 = vperm.xlu2 %344, %v123_v15  }
  0x8f   :  { %v89_v18 = vsub.f32 %v85_v17, %v87_v16 }
  0x91   :  { %v351_v19 = vpop.eup %350  ;;  %v94_v20 = vadd.f32 1e-05, %v89_v18 }
  0x92   :  { %v96_v21 = vmul.f32 %v351_v19, %v93_v11  ;;  %vm102_vm1 = vweird.f32 %v351_v19 }
  0x93   :  { %352 = vrsqrt.f32 %v94_v20  ;;  %vm103_vm3 = vmor %vm101_vm2, %vm102_vm1  ;;  %vm111_vm5 = vweird.f32 %v94_v20 }
  0x94   :  { %v97_v22 = vmul.f32 %v351_v19, %v96_v21  ;;  %v124_v23 = vld [vmem:[#allocation2 + $0x8] sm:$0xff] }
  0x95   :  { %132 = vperm.xlu2 %344, %v124_v23  }
  0x96   :  { %v98_v24 = vmul.f32 0.5, %v97_v22 }
  0x98   :  { %v99_v25 = vsub.f32 1.5, %v98_v24 }
  0x99   :  { %v353_v26 = vpop.eup %352 }
  0x9a   :  { %v100_v27 = vmul.f32 %v351_v19, %v99_v25  ;;  %v106_v28 = vmul.f32 %v353_v26, %v94_v20  ;;  %vm112_vm4 = vweird.f32 %v353_v26 }
  0x9b   :  { %vm113_vm6 = vmor %vm111_vm5, %vm112_vm4 }
  0x9c   :  { %v104_v29 = vsel %vm103_vm3, %v351_v19, %v100_v27  ;;  %v107_v30 = vmul.f32 %v353_v26, %v106_v28 }
  0x9d   :  { %115 = vst.msk [vmem:[#allocation3] sm:$0xff] %vm90_vm0, %v104_v29 }
  0x9e   :  { %v108_v31 = vmul.f32 0.5, %v107_v30 }
  0xa0   :  { %v109_v32 = vsub.f32 1.5, %v108_v31 }
  0xa2   :  { %v110_v33 = vmul.f32 %v353_v26, %v109_v32 }
  0xa4   :  { %v114_v34 = vsel %vm113_vm6, %v353_v26, %v110_v33  ;;  %v137_v35 = vld [vmem:[#allocation3] sm:$0xff] }
  0xa5   :  { %116 = vst.msk [vmem:[#allocation3 + $0x8] sm:$0xff] %vm90_vm0, %v114_v34  ;;  %141 = vperm.xlu0 %345, %v137_v35  }
  0xac   :  { %v138_v36 = vld [vmem:[#allocation3 + $0x8] sm:$0xff] }
  0xad   :  { %146 = vperm.xlu1 %346, %v138_v36  }
  0xe7   :  { %v128_v45 = vpop.permute.xlu2 %127 }
  0xe8   :  { %v135_v47 = vsub.f32 %v507_v0, %v128_v45 }
  0xef   :  { %v133_v48 = vpop.permute.xlu2 %132 }
  0xf0   :  { %v136_v51 = vsub.f32 %v512_v2, %v133_v48 }
 0x117   :  { %v142_v46 = vpop.permute.xlu0 %141 }
 0x118   :  { %v149_v50 = vmul.f32 %v142_v46, %v135_v47 }
 0x11a   :  { %v156_v53 = vmul.f32 %v347_v49, %v149_v50 }
 0x11c   :  { %v163_v57 = vadd.f32 %v348_v55, %v156_v53 }
 0x11f   :  { %v147_v52 = vpop.permute.xlu1 %146 }
 0x120   :  { %v150_v54 = vmul.f32 %v147_v52, %v136_v51 }
 0x122   :  { %v157_v56 = vmul.f32 %v347_v49, %v150_v54 }
 0x124   :  { %v164_v58 = vadd.f32 %v348_v55, %v157_v56 }
 0x126   :  { %v165_v59 = vpack.c.bf16 %v164_v58, %v163_v57 }
 0x128   :  { %238 = vmatmul.bf16.vlgmr.msra.gmra.mxu0 %v165_v59 }
 0x1a5   :  { %v239_v61 = vpop.f32.mrf.mxu0 }
 0x1a6   :  { %v268_v62 = vadd.f32 %v349_v60, %v239_v61 }
 0x1a8   :  { %270 = vst [vmem:[#allocation11] sm:$0xff] %v268_v62 }
 0x1ad   :  { %v241_v63 = vpop.f32.mrf.mxu0 }
 0x1ae   :  { %v269_v0 = vadd.f32 %v349_v60, %v241_v63 }
 0x1b0   :  { %271 = vst [vmem:[#allocation11 + $0x8] sm:$0xff] %v269_v0 }
 0x1b1   :  { %284 = dma.vmem_to_hbm [thread:$0]  %s277_s14, 256, %s279_s17, [#allocation7], %s458_s28, %s458_s28, %s459_s29  }
 0x1b2   :  { %454 = dma.done.wait [#allocation7], 256  }
 0x1b3   :  { %455 = vsyncadd [#allocation7], 4294967040 }
 0x1b4   :  { %289 = vsyncpa [#allocation6], 1 }
 0x1b5   :  { %290 = vsyncpa [#allocation9], 1 }
 0x1b6   :  { %291 = vsyncpa [#allocation7], 1 }

</bundles_post_ra>
